<compile_context>
chip_gen: v5e
topology: v5e:2x2
jax: 0.10.0
libtpu: 0.0.40
codegen_flags: <defaults>
</compile_context>

<pallas_src>
import jax
import jax.numpy as jnp
from jax.experimental import pallas as pl
from jax.experimental.pallas import tpu as pltpu

_OUT_COLS = 8                               # packed output columns (4 used)
_C_LOGP, _C_ACT, _C_ENT, _C_CRITIC = 0, 1, 2, 3
_DEFAULT_BLOCK_B = 1024                     # rows per grid step (multiple of 8)


def _round_up(n, m):
    return (n + m - 1) // m * m


def generator_kernel(x_ref, w1e_ref, b1e_ref, w2e_ref, b2_ref, out_ref):
    """One batch tile: fused (hidden + critic) linear -> sigmoid -> out linear ->
    softmax / argmax / log_prob / entropy, packed into a (TB, 8) strip."""
    hid_p1 = w1e_ref.shape[1]                     # hid + 1 (last column = critic)

    # In-kernel MXU-dtype cast (cheap VPU op hidden under the matmul; avoids a
    # separate whole-batch HBM cast pass in the wrapper when mxu_dtype=bf16).
    x = x_ref[...].astype(w1e_ref.dtype)

    # Fused first linear: cols [0:hid] = hidden pre-activation, col [hid] = critic.
    mid_ext = jnp.dot(x, w1e_ref[...], preferred_element_type=jnp.float32) + b1e_ref[...]
    critic = mid_ext[:, hid_p1 - 1:hid_p1]        # (TB, 1) — only the critic lane sliced

    # sigmoid via tanh: EUP op, no full-tile VALU divide.  Applied to the whole
    # extended tile (incl. the critic lane) so no value-slice copy of mid is
    # needed; the extra lane is killed by the zero K-row appended to w2.
    h_ext = 0.5 * jnp.tanh(0.5 * mid_ext) + 0.5

    # Output linear (operands may be bf16 on v6e/v7x; always accumulate in f32).
    logits = jnp.dot(h_ext.astype(w2e_ref.dtype), w2e_ref[...],
                     preferred_element_type=jnp.float32) + b2_ref[...]

    # Numerically-stable softmax / log-softmax over features (dim=1).
    m = jnp.max(logits, axis=-1, keepdims=True)
    e = jnp.exp(logits - m)
    s = jnp.sum(e, axis=-1, keepdims=True)
    log_probs = logits - m - jnp.log(s)
    # EUP approx reciprocal + one Newton step on the (TB,1) column only:
    # near-exact probs/entropy with no wide VALU divide.
    r = pl.reciprocal(s, approx=True)
    r = r * (2.0 - s * r)
    probs = e * r

    # argmax(dim=1) with first-max tie-break (matches torch.argmax).
    tb, n = logits.shape
    idx = jax.lax.broadcasted_iota(jnp.int32, (tb, n), 1)
    action = jnp.min(jnp.where(logits == m, idx, n), axis=-1, keepdims=True)

    logp = jnp.max(log_probs, axis=-1, keepdims=True)       # log_prob of the argmax
    ent = -jnp.sum(probs * log_probs, axis=-1, keepdims=True)

    # Single packed (TB, 8) store: 4 real columns + zero padding.
    out_ref[...] = jnp.concatenate(
        [logp, action.astype(jnp.float32), ent, critic,
         jnp.zeros((tb, _OUT_COLS - 4), jnp.float32)], axis=1)


def prepare_generator_params(w1, b1, w2, b2, wc, bc, *, mxu_dtype=jnp.float32):
    """Build the fused / padded parameter set once (hoisted out of the per-call path).

    w1: (inC, 2*inC), b1: (1, 2*inC)   -- self.hidden (transposed: x @ W)
    w2: (2*inC, outC), b2: (1, outC)   -- self.out
    wc: (outC, 1),     bc: (1, 1)      -- the fresh criticFC built inside forward()
                                          (only dimensionally valid because outC == 2*inC)
    mxu_dtype: pass jnp.bfloat16 on v6e/v7x at production sizes to halve MXU
    operand / VMEM weight traffic; keep jnp.float32 on v5e (no bf16 VPU/EUP path)
    and for bit-stable argmax at tiny sizes.
    """
    hid = w1.shape[1]
    out_c = w2.shape[1]
    if wc.shape[0] != hid:
        raise ValueError("criticFC(mid) requires outChannel == 2*inChannel")

    # Fold the critic head into the first linear (algebraically identical):
    #   mid @ wc + bc == x @ (w1 @ wc) + (b1 @ wc + bc)
    w1e = jnp.concatenate([w1, w1 @ wc], axis=1)            # (in_c, hid+1)
    b1e = jnp.concatenate([b1, b1 @ wc + bc], axis=1)       # (1,   hid+1)
    # Zero K-row so matmul-2 can consume sigmoid(mid_ext) without slicing mid.
    w2e = jnp.concatenate([w2, jnp.zeros((1, out_c), w2.dtype)], axis=0)  # (hid+1, out_c)

    return (w1e.astype(mxu_dtype), b1e.astype(jnp.float32),
            w2e.astype(mxu_dtype), b2.astype(jnp.float32))


def generator_forward(x, params, *, block_b=None):
    """Generator.forward.  `params` comes from prepare_generator_params.

    Returns (log_prob[B], action[B] int32, entropy[B], criticScore[B,1]).
    """
    w1e, b1e, w2e, b2 = params
    B, in_c = x.shape
    hid_p1 = w1e.shape[1]
    out_c = w2e.shape[1]
    if out_c >= (1 << 24):
        raise ValueError("action is round-tripped through an f32 lane; needs outC < 2^24")

    # Batch tile: multiple of 8 (f32 sublane).  Large default to amortise the
    # ~0.35 us per-grid-step overhead; when the batch spans more than one tile,
    # cap the tile so there are >=2 near-equal steps (v7x megacore sharding via
    # dimension_semantics=("parallel",) needs >=2 steps to use both TensorCores).
    if block_b is None:
        block_b = _DEFAULT_BLOCK_B
    block_b = max(8, _round_up(block_b, 8))
    if B <= block_b:
        block_b = _round_up(B, 8)                       # single tile, minimal padding
    else:
        block_b = min(block_b, _round_up(pl.cdiv(_round_up(B, 8), 2), 8))
    b_pad = _round_up(B, block_b)
    xp = x if b_pad == B else jnp.pad(x, ((0, b_pad - B), (0, 0)))

    # Explicit VMEM budget: double-buffered streamed tiles + (double-buffered)
    # resident weights + a conservative intermediates estimate.  Never below the
    # 32 MiB default (so tiny configs compile exactly as before), capped at 128 MiB.
    w_isz = jnp.dtype(w1e.dtype).itemsize
    weight_bytes = (w1e.size + w2e.size) * w_isz + (b1e.size + b2.size) * 4
    stream_bytes = 2 * block_b * (in_c * jnp.dtype(x.dtype).itemsize + _OUT_COLS * 4)
    interm_bytes = 8 * block_b * max(hid_p1, out_c, 128) * 4
    vmem_limit = int(min(128 << 20,
                         max(32 << 20, 2 * weight_bytes + stream_bytes + interm_bytes)))

    out = pl.pallas_call(
        generator_kernel,
        out_shape=jax.ShapeDtypeStruct((b_pad, _OUT_COLS), jnp.float32),
        grid=(b_pad // block_b,),
        in_specs=[
            pl.BlockSpec((block_b, in_c), lambda i: (i, 0)),     # x: streamed per tile
            pl.BlockSpec((in_c, hid_p1), lambda i: (0, 0)),      # weights: VMEM-resident
            pl.BlockSpec((1, hid_p1), lambda i: (0, 0)),
            pl.BlockSpec((hid_p1, out_c), lambda i: (0, 0)),
            pl.BlockSpec((1, out_c), lambda i: (0, 0)),
        ],
        out_specs=pl.BlockSpec((block_b, _OUT_COLS), lambda i: (i, 0)),
        compiler_params=pltpu.CompilerParams(
            dimension_semantics=("parallel",),       # shard batch across v7x TensorCores
            vmem_limit_bytes=vmem_limit),
    )(xp, w1e, b1e, w2e, b2)

    out = out[:B]
    logp = out[:, _C_LOGP]
    action = out[:, _C_ACT].astype(jnp.int32)        # small ints, exact in f32
    ent = out[:, _C_ENT]
    critic = out[:, _C_CRITIC:_C_CRITIC + 1]         # (B, 1) like the torch Linear output
    return logp, action, ent, critic


def torch_linear_init(key, fan_in, fan_out):
    """Deterministic stand-in for torch.nn.Linear default init: U(-k, k), k=1/sqrt(fan_in).
    Weight is returned transposed as (fan_in, fan_out) so the kernel does x @ W."""
    k = 1.0 / jnp.sqrt(jnp.float32(fan_in))
    kw, kb = jax.random.split(key)
    w = jax.random.uniform(kw, (fan_in, fan_out), jnp.float32, -k, k)
    b = jax.random.uniform(kb, (1, fan_out), jnp.float32, -k, k)
    return w, b


if __name__ == "__main__":
    # Small, consistent shapes: generatorIn=16, generatorOut=32 (== 2*inC so the
    # criticFC(mid) call in the original forward is dimensionally valid).
    B, IN_C = 20, 16
    HID = IN_C * 2          # 32
    OUT_C = 2 * IN_C        # 32

    root = jax.random.PRNGKey(0)
    kx, k1, k2, kc = jax.random.split(root, 4)

    x = jax.random.normal(kx, (B, IN_C), jnp.float32)
    w1, b1 = torch_linear_init(k1, IN_C, HID)      # self.hidden
    w2, b2 = torch_linear_init(k2, HID, OUT_C)     # self.out
    wc, bc = torch_linear_init(kc, OUT_C, 1)       # the fresh criticFC in forward

    params = prepare_generator_params(w1, b1, w2, b2, wc, bc)
    fwd = jax.jit(generator_forward, static_argnames=("block_b",))

    # (a) explicit small tile: exercises the 3-step batch grid + pad/slice path
    res_a = fwd(x, params, block_b=8)
    # (b) default tile: single-tile path
    res_b = fwd(x, params)
    jax.block_until_ready((res_a, res_b))

    # pure-JAX reference of the module semantics
    mid = x @ w1 + b1
    h = jax.nn.sigmoid(mid)
    logits = h @ w2 + b2
    probs = jax.nn.softmax(logits, axis=1)
    ref_action = jnp.argmax(probs, axis=1).astype(jnp.int32)
    ref_logp = jax.nn.log_softmax(logits, axis=1)[jnp.arange(B), ref_action]
    ref_ent = -jnp.sum(probs * jnp.log(probs), axis=1)
    ref_critic = mid @ wc + bc

    for logp, action, ent, critic in (res_a, res_b):
        assert jnp.array_equal(action, ref_action), "action mismatch"
        assert jnp.allclose(logp, ref_logp, atol=1e-4), "log_prob mismatch"
        assert jnp.allclose(ent, ref_ent, atol=1e-3), "entropy mismatch"
        assert jnp.allclose(critic, ref_critic, atol=1e-4), "critic mismatch"

    print("KERNEL_OK")
</pallas_src>

<mosaic_0001>
module attributes {stable_mosaic.version = 11 : i64} {
  func.func @generator_kernel(%arg0: i32, %arg1: memref<8x16xf32, #tpu.memory_space<vmem>>, %arg2: memref<16x33xf32, #tpu.memory_space<vmem>>, %arg3: memref<1x33xf32, #tpu.memory_space<vmem>>, %arg4: memref<33x32xf32, #tpu.memory_space<vmem>>, %arg5: memref<1x32xf32, #tpu.memory_space<vmem>>, %arg6: memref<8x8xf32, #tpu.memory_space<vmem>>) attributes {dimension_semantics = [#tpu.dimension_semantics<parallel>], iteration_bounds = array<i64: 3>, scalar_prefetch = 0 : i64, scratch_operands = 0 : i64, tpu.core_type = #tpu.core_type<tc>, window_params = [{transform_indices = @transform_0, window_bounds = array<i64: 8, 16>}, {pipeline_mode = #tpu.pipeline_mode<synchronous>, transform_indices = @transform_1, window_bounds = array<i64: 16, 33>}, {pipeline_mode = #tpu.pipeline_mode<synchronous>, transform_indices = @transform_2, window_bounds = array<i64: 1, 33>}, {pipeline_mode = #tpu.pipeline_mode<synchronous>, transform_indices = @transform_3, window_bounds = array<i64: 33, 32>}, {pipeline_mode = #tpu.pipeline_mode<synchronous>, transform_indices = @transform_4, window_bounds = array<i64: 1, 32>}, {transform_indices = @transform_5, window_bounds = array<i64: 8, 8>}]} {
    %c0 = arith.constant 0 : index
    %c0_0 = arith.constant 0 : index
    %0 = vector.load %arg1[%c0, %c0_0] : memref<8x16xf32, #tpu.memory_space<vmem>>, vector<8x16xf32>
    %c0_1 = arith.constant 0 : index
    %c0_2 = arith.constant 0 : index
    %1 = vector.load %arg2[%c0_1, %c0_2] : memref<16x33xf32, #tpu.memory_space<vmem>>, vector<16x33xf32>
    %cst = arith.constant dense<0.000000e+00> : vector<8x33xf32>
    %2 = tpu.matmul %0, %1, %cst {dimension_numbers = #tpu.dot_dimension_numbers<[1], [0], [0], [1], [0, 0, 1, 1], [], []>} : vector<8x16xf32>, vector<16x33xf32>, vector<8x33xf32> -> vector<8x33xf32>
    %c0_3 = arith.constant 0 : index
    %c0_4 = arith.constant 0 : index
    %3 = vector.load %arg3[%c0_3, %c0_4] : memref<1x33xf32, #tpu.memory_space<vmem>>, vector<1x33xf32>
    %4 = vector.broadcast %3 : vector<1x33xf32> to vector<8x33xf32>
    %5 = arith.addf %2, %4 : vector<8x33xf32>
    %6 = vector.extract_strided_slice %5 {offsets = [0, 32], sizes = [8, 1], strides = [1, 1]} : vector<8x33xf32> to vector<8x1xf32>
    %cst_5 = arith.constant 5.000000e-01 : f32
    %7 = vector.broadcast %cst_5 : f32 to vector<8x33xf32>
    %8 = arith.mulf %7, %5 : vector<8x33xf32>
    %9 = math.tanh %8 : vector<8x33xf32>
    %cst_6 = arith.constant 5.000000e-01 : f32
    %10 = vector.broadcast %cst_6 : f32 to vector<8x33xf32>
    %11 = arith.mulf %10, %9 : vector<8x33xf32>
    %cst_7 = arith.constant 5.000000e-01 : f32
    %12 = vector.broadcast %cst_7 : f32 to vector<8x33xf32>
    %13 = arith.addf %11, %12 : vector<8x33xf32>
    %c0_8 = arith.constant 0 : index
    %c0_9 = arith.constant 0 : index
    %14 = vector.load %arg4[%c0_8, %c0_9] : memref<33x32xf32, #tpu.memory_space<vmem>>, vector<33x32xf32>
    %cst_10 = arith.constant dense<0.000000e+00> : vector<8x32xf32>
    %15 = tpu.matmul %13, %14, %cst_10 {dimension_numbers = #tpu.dot_dimension_numbers<[1], [0], [0], [1], [0, 0, 1, 1], [], []>} : vector<8x33xf32>, vector<33x32xf32>, vector<8x32xf32> -> vector<8x32xf32>
    %c0_11 = arith.constant 0 : index
    %c0_12 = arith.constant 0 : index
    %16 = vector.load %arg5[%c0_11, %c0_12] : memref<1x32xf32, #tpu.memory_space<vmem>>, vector<1x32xf32>
    %17 = vector.broadcast %16 : vector<1x32xf32> to vector<8x32xf32>
    %18 = arith.addf %15, %17 : vector<8x32xf32>
    %cst_13 = arith.constant dense<0xFF800000> : vector<8xf32>
    %19 = vector.multi_reduction <maximumf>, %18, %cst_13 [1] : vector<8x32xf32> to vector<8xf32>
    %20 = vector.shape_cast %19 : vector<8xf32> to vector<8x1xf32>
    %21 = vector.broadcast %20 : vector<8x1xf32> to vector<8x32xf32>
    %22 = arith.subf %18, %21 : vector<8x32xf32>
    %23 = math.exp %22 : vector<8x32xf32>
    %cst_14 = arith.constant dense<0.000000e+00> : vector<8xf32>
    %24 = vector.multi_reduction <add>, %23, %cst_14 [1] : vector<8x32xf32> to vector<8xf32>
    %25 = vector.shape_cast %24 : vector<8xf32> to vector<8x1xf32>
    %26 = vector.broadcast %20 : vector<8x1xf32> to vector<8x32xf32>
    %27 = arith.subf %18, %26 : vector<8x32xf32>
    %28 = math.log %25 : vector<8x1xf32>
    %29 = vector.broadcast %28 : vector<8x1xf32> to vector<8x32xf32>
    %30 = arith.subf %27, %29 : vector<8x32xf32>
    %31 = tpu.reciprocal %25 {approx = true} : vector<8x1xf32> -> vector<8x1xf32>
    %32 = arith.mulf %25, %31 : vector<8x1xf32>
    %cst_15 = arith.constant 2.000000e+00 : f32
    %33 = vector.broadcast %cst_15 : f32 to vector<8x1xf32>
    %34 = arith.subf %33, %32 : vector<8x1xf32>
    %35 = arith.mulf %31, %34 : vector<8x1xf32>
    %36 = vector.broadcast %35 : vector<8x1xf32> to vector<8x32xf32>
    %37 = arith.mulf %23, %36 : vector<8x32xf32>
    %38 = tpu.iota {dimensions = array<i32: 1>} : vector<8x32xi32>
    %39 = vector.broadcast %20 : vector<8x1xf32> to vector<8x32xf32>
    %40 = arith.cmpf oeq, %18, %39 : vector<8x32xf32>
    %c32_i32 = arith.constant 32 : i32
    %41 = vector.broadcast %c32_i32 : i32 to vector<8x32xi32>
    %42 = arith.select %40, %38, %41 : vector<8x32xi1>, vector<8x32xi32>
    %cst_16 = arith.constant dense<2147483647> : vector<8xi32>
    %43 = vector.multi_reduction <minsi>, %42, %cst_16 [1] : vector<8x32xi32> to vector<8xi32>
    %44 = vector.shape_cast %43 : vector<8xi32> to vector<8x1xi32>
    %cst_17 = arith.constant dense<0xFF800000> : vector<8xf32>
    %45 = vector.multi_reduction <maximumf>, %30, %cst_17 [1] : vector<8x32xf32> to vector<8xf32>
    %46 = vector.shape_cast %45 : vector<8xf32> to vector<8x1xf32>
    %47 = arith.mulf %37, %30 : vector<8x32xf32>
    %cst_18 = arith.constant dense<0.000000e+00> : vector<8xf32>
    %48 = vector.multi_reduction <add>, %47, %cst_18 [1] : vector<8x32xf32> to vector<8xf32>
    %49 = vector.shape_cast %48 : vector<8xf32> to vector<8x1xf32>
    %cst_19 = arith.constant 0.000000e+00 : f32
    %50 = vector.broadcast %cst_19 : f32 to vector<8x1xf32>
    %51 = arith.subf %50, %49 : vector<8x1xf32>
    %52 = arith.sitofp %44 : vector<8x1xi32> to vector<8x1xf32>
    %cst_20 = arith.constant 0.000000e+00 : f32
    %53 = vector.broadcast %cst_20 : f32 to vector<8x4xf32>
    %54 = tpu.concatenate %46, %52, %51, %6, %53 in 1 : vector<8x1xf32>, vector<8x1xf32>, vector<8x1xf32>, vector<8x1xf32>, vector<8x4xf32> -> vector<8x8xf32>
    %c0_21 = arith.constant 0 : index
    %c0_22 = arith.constant 0 : index
    %55 = vector.load %arg6[%c0_21, %c0_22] : memref<8x8xf32, #tpu.memory_space<vmem>>, vector<8x8xf32>
    tpu.vector_store %arg6[%c0_21, %c0_22], %54 {strides = array<i32>} : memref<8x8xf32, #tpu.memory_space<vmem>>, vector<8x8xf32>,
    return
  }
  func.func @transform_0(%arg0: i32) -> (i32, i32) {
    %c0_i32 = arith.constant 0 : i32
    %c0_i32_0 = arith.constant 0 : i32
    return %arg0, %c0_i32 : i32, i32
  }
  func.func @transform_1(%arg0: i32) -> (i32, i32) {
    %c0_i32 = arith.constant 0 : i32
    %c0_i32_0 = arith.constant 0 : i32
    %c0_i32_1 = arith.constant 0 : i32
    return %c0_i32, %c0_i32_0 : i32, i32
  }
  func.func @transform_2(%arg0: i32) -> (i32, i32) {
    %c0_i32 = arith.constant 0 : i32
    %c0_i32_0 = arith.constant 0 : i32
    %c0_i32_1 = arith.constant 0 : i32
    return %c0_i32, %c0_i32_0 : i32, i32
  }
  func.func @transform_3(%arg0: i32) -> (i32, i32) {
    %c0_i32 = arith.constant 0 : i32
    %c0_i32_0 = arith.constant 0 : i32
    %c0_i32_1 = arith.constant 0 : i32
    return %c0_i32, %c0_i32_0 : i32, i32
  }
  func.func @transform_4(%arg0: i32) -> (i32, i32) {
    %c0_i32 = arith.constant 0 : i32
    %c0_i32_0 = arith.constant 0 : i32
    %c0_i32_1 = arith.constant 0 : i32
    return %c0_i32, %c0_i32_0 : i32, i32
  }
  func.func @transform_5(%arg0: i32) -> (i32, i32) {
    %c0_i32 = arith.constant 0 : i32
    %c0_i32_0 = arith.constant 0 : i32
    return %arg0, %c0_i32 : i32, i32
  }
}

</mosaic_0001>

<bundles_post_ra>
// kernel: generator_forward.1
= control target key start
LH: loop header
LB: loop body
LE: loop exit
PB: predicated region body
PF: predicated region fallthrough
CT: control target
= control target key end

     0   :  { %s475_s18 = smov 0   ;;  %s531_s0 = inlined_call_operand.vmem [shape: f32[24,16], index: 0, kind: input, shape index: {}]   ;;  %s532_s1 = inlined_call_operand.vmem [shape: f32[16,33], index: 1, kind: input, shape index: {}]   ;;  %s533_s2 = inlined_call_operand.vmem [shape: f32[1,33], index: 2, kind: input, shape index: {}]   ;;  %s534_s3 = inlined_call_operand.vmem [shape: f32[33,32], index: 3, kind: input, shape index: {}]   ;;  %s535_s4 = inlined_call_operand.vmem [shape: f32[1,32], index: 4, kind: input, shape index: {}]   ;;  %s536_s5 = inlined_call_operand.vmem [shape: f32[24,8], index: 5, kind: output, shape index: {}]  }
   0x1 LB: > { %s405_s19 = sadd.s32 4294967295, %s442_s18   ;;  %p409_p0 = scmp.ge.s32.totalorder %s442_s18, 1  ;;  %s442_s18 = sphi %s475_s18, %s15_s18  }
   0x2   : > { %p186_p1 = scmp.lt.s32.totalorder %s442_s18, 4 }
   0x4   : > { %p187_p2 = pnand %p409_p0, %p186_p1 }
   0x5   : > { %p212_p3 = scmp.lt.s32.totalorder (!%p187_p2), %s405_s19, 2  ;;  %s444_s17 = smov (!%p187_p2), 99  }
   0x6   : > { %190 = sbr.rel (%p187_p2) target bundleno = 677 (0x2a5), region = 40 }
   0xb   : > { %v222_v0 = vld [vmem:[%s532_s1 + $0x8] sm:$0xff]  ;;  %v221_v1 = vld [vmem:[%s532_s1] sm:$0xff]  ;;  %s538_s19 = smov (!%p212_p3, %s405_s19), 2  ;;  %vm227_vm0 = vcmask 130048   ;;  %vm268_vm1 = vcmask 1040384   ;;  %v258_v4 = vld [vmem:[%s534_s3 + $0x18] sm:$0xff]  ;;  %v310_v19 = vlaneseq }
   0xc   : > { %245 = vmatpush.msra.mxu0 %v222_v0  ;;  %s410_s24 = sshll.u32 %s538_s19, 3  ;;  %v259_v3 = vld [vmem:[%s534_s3 + $0x20] sm:$0x1]  ;;  %v257_v5 = vld [vmem:[%s534_s3 + $0x10] sm:$0xff]  ;;  %v256_v6 = vld [vmem:[%s534_s3 + $0x8] sm:$0xff]  ;;  %vm264_vm2 = vcmask 269312  }
   0xd   : > { %s215_s27 = scalar_lea.vmem %s531_s0, %s410_s24  ;;  %413 = vmatpush.msk.msra.mxu1 %vm268_vm1, %v259_v3  ;;  %v255_v7 = vld [vmem:[%s534_s3] sm:$0xff]  ;;  %vm292_vm3 = vcmask 261120   ;;  %v311_v20 = vand.u32 127, %v310_v19  ;;  %vm342_vm6 = vcmask 7168   ;;  %vm344_vm7 = vcmask 15360   ;;  %s219_s22 = scalar_lea.vmem %s536_s5, %s410_s24 }
   0xe   : > { %246 = vmatpush.msra.mxu0 %v221_v1  ;;  %v220_v2 = vld [vmem:[%s215_s27] sm:$0xff]  ;;  %vm346_vm8 = vcmask 23552   ;;  %vm348_vm9 = vcmask 31744   ;;  %vm350_vm10 = vcmask 64512  }
   0xf   : > { %412 = vmatmul.msk.f32.vlgmr.msra.gmra.mxu0 %vm227_vm0, %v220_v2  ;;  %284 = vmatpush.msra.mxu1 %v258_v4  ;;  %v426_v8 = vld [vmem:[%s533_s2] ss:$0 sm:$0xff] }
  0x10   : > { %v427_v15 = vld [vmem:[%s535_s4] ss:$0 sm:$0xff] }
  0x11   : > { %285 = vmatpush.msra.mxu1 %v257_v5 }
  0x13   : > { %286 = vmatpush.msra.mxu1 %v256_v6 }
  0x15   : > { %287 = vmatpush.msra.mxu1 %v255_v7 }
  0x8c   : > { %v248_v9 = vpop.f32.mrf.mxu0 }
  0x8d   : > { %v249_v10 = vadd.f32 %v426_v8, %v248_v9 }
  0x8f   : > { %v251_v11 = vmul.f32 0.5, %v249_v10 }
  0x91   : > { %428 = vtanh.f32 %v251_v11 }
  0x97   : > { %v429_v12 = vpop.eup %428 }
  0x98   : > { %v253_v13 = vmul.f32 0.5, %v429_v12 }
  0x9a   : > { %v254_v14 = vadd.f32 0.5, %v253_v13 }
  0x9c   : > { %414 = vmatmul.msk.f32.vlgmr.msra.gmra.mxu1 %vm264_vm2, %v254_v14 }
 0x119   : > { %v289_v16 = vpop.f32.mrf.mxu1 }
 0x11a   : > { %v290_v17 = vadd.f32 %v427_v15, %v289_v16 }
 0x11c   : > { %v293_v18 = vsel %vm292_vm3, %v290_v17, -inf }
 0x11d   : > { %294 = vmax.xlane.f32.xlu0 %v293_v18 }
 0x190   : > { %v295_v21 = vpop.xlane.xlu0 %294 }
 0x191   : > { %v296_v22 = vsub.f32 %v290_v17, %v295_v21  ;;  %vm312_vm4 = vcmp.eq.f32.partialorder %v290_v17, %v295_v21 }
 0x192   : > { %v313_v23 = vsel %vm312_vm4, %v311_v20, 32 }
 0x193   : > { %v297_v24 = vmul.f32 1.442695, %v296_v22  ;;  %v314_v25 = vsel %vm292_vm3, %v313_v23, 2147483647 }
 0x194   : > { %v316_v26 = vshra.s32 %v314_v25, 16  ;;  %v315_v30 = vand.u32 65535, %v314_v25 }
 0x195   : > { %430 = vpow2.f32 %v297_v24 }
 0x196   : > { %v318_v27 = vcvt.s32.f32 %v316_v26  ;;  %v317_v32 = vcvt.s32.f32 %v315_v30 }
 0x198   : > { %319 = vmin.xlane.f32.xlu1 %v318_v27 }
 0x19b   : > { %v431_v28 = vpop.eup %430 }
 0x19c   : > { %v299_v29 = vsel %vm292_vm3, %v431_v28, 0.0 }
 0x19d   : > { %300 = vadd.xlane.f32.xlu0 %v299_v29 }
 0x1b1   : > { %339 = vrot.lane.b32.xlu0 %v249_v10, %s444_s17 }
 0x20b   : > { %v320_v31 = vpop.xlane.xlu1 %319 }
 0x20c   : > { %vm321_vm5 = vcmp.eq.f32.partialorder %v318_v27, %v320_v31  ;;  %v326_v47 = vcvt.f32.s32 %v320_v31 }
 0x20d   : > { %v322_v33 = vsel %vm321_vm5, %v317_v32, inf }
 0x20e   : > { %323 = vmin.xlane.f32.xlu1 %v322_v33  ;;  %v327_v50 = vshll.u32 %v326_v47, 16 }
 0x210   : > { %v301_v34 = vpop.xlane.xlu0 %300 }
 0x211   : > { %432 = vlog2.f32 %v301_v34 }
 0x212   : > { %434 = vrcp.f32 %v301_v34 }
 0x217   : > { %v433_v35 = vpop.eup %432 }
 0x218   : > { %v435_v36 = vpop.eup %434  ;;  %v303_v38 = vmul.f32 0.6931472, %v433_v35 }
 0x219   : > { %v306_v37 = vmul.f32 %v435_v36, %v301_v34 }
 0x21a   : > { %v304_v41 = vsub.f32 %v296_v22, %v303_v38 }
 0x21b   : > { %v307_v39 = vsub.f32 2.0, %v306_v37 }
 0x21c   : > { %v329_v45 = vsel %vm292_vm3, %v304_v41, -inf }
 0x21d   : > { %v308_v40 = vmul.f32 %v435_v36, %v307_v39 }
 0x21f   : > { %v309_v42 = vmul.f32 %v431_v28, %v308_v40 }
 0x221   : > { %v332_v43 = vmul.f32 %v309_v42, %v304_v41 }
 0x223   : > { %v333_v44 = vsel %vm292_vm3, %v332_v43, 0.0  ;;  %v340_v56 = vpop.permute.xlu0 %339 }
 0x224   : > { %334 = vadd.xlane.f32.xlu2 %v333_v44 }
 0x22c   : > { %330 = vmax.xlane.f32.xlu2 %v329_v45 }
 0x281   : > { %v324_v46 = vpop.xlane.xlu1 %323 }
 0x282   : > { %v325_v48 = vcvt.f32.s32 %v324_v46 }
 0x284   : > { %v328_v51 = vadd.s32 %v327_v50, %v325_v48 }
 0x286   : > { %v337_v52 = vcvt.s32.f32 %v328_v51 }
 0x297   : > { %v335_v49 = vpop.xlane.xlu2 %334 }
 0x298   : > { %v336_v53 = vsub.f32 0.0, %v335_v49 }
 0x29f   : > { %v331_v54 = vpop.xlane.xlu2 %330 }
 0x2a0   : > { %v343_v55 = vsel %vm342_vm6, %v331_v54, %v337_v52 }
 0x2a1   : > { %v345_v57 = vsel %vm344_vm7, %v343_v55, %v336_v53 }
 0x2a2   : > { %v347_v58 = vsel %vm346_vm8, %v345_v57, %v340_v56 }
 0x2a3   : > { %v349_v59 = vsel %vm348_vm9, %v347_v58, 0.0 }
 0x2a4   : > { %351 = vst.msk [vmem:[%s219_s22] sm:$0xff] %vm350_vm10, %v349_v59 }
 0x2a5 PF: > { %s15_s18 = sadd.s32 1, %s442_s18  }
 0x2a6   : > { %p12_p4 = scmp.ge.s32.totalorder %s15_s18, 5  }
 0x2a8   :  { %14 = sbr.rel (!%p12_p4) target bundleno = 1 (0x1), region = 70 }

</bundles_post_ra>
